<compile_context>
chip_gen: v7x
topology: tpu7x:2x2x1
jax: 0.10.0
libtpu: 0.0.40
codegen_flags: <defaults>
</compile_context>

<pallas_src>
import functools

import jax
import jax.numpy as jnp
from jax.experimental import pallas as pl
from jax.experimental.pallas import tpu as pltpu

_MiB = 1 << 20


def netvlad_kernel(x_ref, w_ref, b_ref, cent_ref, out_ref, va_acc, as_acc,
                   *, bn, s_tile, S, needs_mask):
    # x_ref   : (bn, C, tS)  block of samples, one spatial tile (compute dtype)
    # w_ref   : (K, C)       1x1 conv weight (compute dtype)
    # b_ref   : (K, 1)       conv bias, f32
    # cent_ref: (K, C)       cluster centroids, f32
    # out_ref : (bn, K, C)   normalized VLAD descriptors (pre-flatten)
    # va_acc  : (bn, K, C) f32  running sum_s a[k,s] * x[c,s]
    # as_acc  : (bn, K, 1) f32  running sum_s a[k,s]
    si = pl.program_id(1)

    @pl.when(si == 0)
    def _init():
        va_acc[...] = jnp.zeros_like(va_acc)
        as_acc[...] = jnp.zeros_like(as_acc)

    w = w_ref[...]          # (K, C)
    bias = b_ref[...]       # (K, 1) f32

    if needs_mask:
        lane = jax.lax.broadcasted_iota(jnp.int32, (1, s_tile), 1)
        valid = (lane + si * s_tile) < S          # (1, tS) bool, global index
        valid_f32 = valid.astype(jnp.float32)

    # Static per-sample unroll: each grid step now carries `bn` samples worth of
    # work, amortizing the ~0.35us fixed per-step overhead (review item #1).
    for b in range(bn):
        xb = x_ref[b]                              # (C, tS), compute dtype
        if needs_mask:
            # Zero padded columns so garbage in the ragged tail of the input
            # block can never reach the MXU / softmax.
            xb = jnp.where(valid, xb, 0)

        # 1x1 conv == channel matmul -> soft-assignment logits (K, tS); native
        # (bf16) operands, f32 accumulation on the MXU.
        logits = jnp.dot(w, xb, preferred_element_type=jnp.float32) + bias

        # softmax over clusters (sublane axis K), f32 throughout.
        m = jnp.max(logits, axis=0, keepdims=True)         # (1, tS)
        e = jnp.exp(logits - m)                            # EUP
        denom = jnp.sum(e, axis=0, keepdims=True)          # (1, tS)
        a = e * pl.reciprocal(denom, approx=False)         # exact (review item)

        # Weighted feature sum: contract the S dims directly (no transposes),
        # bf16 operands with f32 accumulation into VMEM scratch.
        va_acc[b] += jax.lax.dot_general(
            a.astype(xb.dtype), xb,
            dimension_numbers=(((1,), (1,)), ((), ())),
            preferred_element_type=jnp.float32)            # (K, C)

        # Assignment mass: must exclude padded columns (softmax of the bias on
        # padded columns is nonzero and would corrupt vlad = va - cent*asum).
        a_mass = a * valid_f32 if needs_mask else a
        as_acc[b] += jnp.sum(a_mass, axis=1, keepdims=True)   # (K, 1)

    @pl.when(si == pl.num_programs(1) - 1)
    def _finalize():
        cent = cent_ref[...]                       # (K, C) f32
        for b in range(bn):
            vlad = va_acc[b] - cent * as_acc[b]    # (K, C) f32
            # Global L2 norm over the flattened descriptor, eps = 1e-12 (torch
            # F.normalize).  NOTE: this module does NOT do per-cluster intra-
            # normalization, so neither do we.
            sq = jnp.sum(vlad * vlad)
            inv = jax.lax.rsqrt(jnp.maximum(sq, 1e-24))
            out_ref[b] = (vlad * inv).astype(out_ref.dtype)


def _tpu_vmem_capacity_bytes():
    try:
        return int(pltpu.get_tpu_info().vmem_capacity_bytes)
    except Exception:
        return None


def _default_x_budget_bytes():
    cap = _tpu_vmem_capacity_bytes()
    if cap is not None and cap <= 96 * _MiB:
        # v7x-class: 64 MiB VMEM per TC -> keep the working set modest; HBM is
        # fast enough that bigger tiles buy nothing.
        return 14 * _MiB
    # v5e / v6e: 128 MiB physical VMEM -> bigger, more deeply overlapped tiles
    # (paired with vmem_limit_bytes below so the scoped limit allows it).
    return 24 * _MiB


def _vmem_need_bytes(s_tile, C, K, bn, x_bytes, out_bytes):
    fixed = (2 * bn * K * C * out_bytes     # output block (double-buffered)
             + 2 * K * C * x_bytes          # weight block
             + 2 * K * C * 4                # centroid block (f32)
             + 2 * K * 4                    # bias block
             + bn * K * (C + 1) * 4)        # f32 accumulators (scratch)
    per_lane = (2 * bn * C * x_bytes        # double-buffered x columns
                + 4 * bn * K * 4)           # f32 softmax temporaries per lane
    return fixed + per_lane * s_tile


def _pick_s_tile(S, C, K, bn, x_bytes, out_bytes, budget_bytes):
    """Largest multiple of 128 (capped at round_up(S,128)) whose working set
    fits the budget.  No divisibility requirement on S: the grid uses cdiv and
    the kernel masks the ragged tail tile."""
    s_max = pl.cdiv(S, 128) * 128
    best = 128
    t = 128
    while t <= s_max:
        if _vmem_need_bytes(t, C, K, bn, x_bytes, out_bytes) <= budget_bytes:
            best = t
        t += 128
    return min(best, s_max)


def netvlad_forward(x_nchw, conv_w, conv_b, centroids, *, s_tile=None, bn=None,
                    compute_dtype=jnp.bfloat16):
    """x_nchw: (N, C, H, W); conv_w: (K, C) (or (K,C,1,1)); conv_b: (K,);
    centroids: (K, C).  Returns (N, K*C) L2-normalized VLAD descriptors."""
    N, C, H, W = x_nchw.shape
    K = centroids.shape[0]
    S = H * W
    out_dtype = x_nchw.dtype

    if bn is None:
        bn = max(1, min(8, N))          # 4-8 samples per grid step (review item)
    n_blocks = pl.cdiv(N, bn)
    Np = n_blocks * bn

    # NCHW -> (N, C, S): free reshape (no transpose); bf16 compute path halves
    # the dominant x HBM stream while accumulation stays f32 in the kernel.
    x_ncs = x_nchw.reshape(N, C, S).astype(compute_dtype)
    if Np != N:
        x_ncs = jnp.pad(x_ncs, ((0, Np - N), (0, 0), (0, 0)))

    w = conv_w.reshape(K, C).astype(compute_dtype)
    b_k1 = conv_b.reshape(K, 1).astype(jnp.float32)
    cent = centroids.astype(jnp.float32)

    x_bytes = jnp.dtype(compute_dtype).itemsize
    out_bytes = jnp.dtype(out_dtype).itemsize
    if s_tile is None:
        s_tile = _pick_s_tile(S, C, K, bn, x_bytes, out_bytes,
                              _default_x_budget_bytes())
    s_steps = pl.cdiv(S, s_tile)
    needs_mask = (S % s_tile) != 0

    # Scoped-VMEM limit: cover the actual working set with headroom, clamped to
    # a safe fraction of physical VMEM (v7x only has 64 MiB per TC).
    need = _vmem_need_bytes(s_tile, C, K, bn, x_bytes, out_bytes)
    vmem_limit = max(32 * _MiB, need * 3 // 2 + 2 * _MiB)
    cap = _tpu_vmem_capacity_bytes()
    if cap is not None:
        vmem_limit = min(vmem_limit, cap * 3 // 4)
    vmem_limit = int(min(vmem_limit, 96 * _MiB))

    kernel = functools.partial(netvlad_kernel, bn=bn, s_tile=s_tile, S=S,
                               needs_mask=needs_mask)

    out = pl.pallas_call(
        kernel,
        out_shape=jax.ShapeDtypeStruct((Np, K, C), out_dtype),
        grid_spec=pltpu.PrefetchScalarGridSpec(
            num_scalar_prefetch=0,
            grid=(n_blocks, s_steps),
            in_specs=[
                # NOTE: if a forced-small s_tile ever exposes the input DMA,
                # bump this spec to pipeline_mode=pl.Buffered(3) before
                # shrinking per-step compute.
                pl.BlockSpec((bn, C, s_tile), lambda nb, s: (nb, 0, s)),
                pl.BlockSpec((K, C), lambda nb, s: (0, 0)),
                pl.BlockSpec((K, 1), lambda nb, s: (0, 0)),
                pl.BlockSpec((K, C), lambda nb, s: (0, 0)),
            ],
            out_specs=pl.BlockSpec((bn, K, C), lambda nb, s: (nb, 0, 0)),
            scratch_shapes=[
                pltpu.VMEM((bn, K, C), jnp.float32),   # va accumulator
                pltpu.VMEM((bn, K, 1), jnp.float32),   # assignment-mass accum
            ],
        ),
        compiler_params=pltpu.CompilerParams(
            dimension_semantics=("parallel", "arbitrary"),
            vmem_limit_bytes=vmem_limit),
    )(x_ncs, w, b_k1, cent)

    # Drop batch padding; (N, K, C) -> (N, K*C) is a metadata-only reshape.
    return out[:N].reshape(N, K * C)


def netvlad_reference(x_nchw, conv_w, conv_b, centroids):
    """Plain-JAX (f32) reference mirroring the PyTorch forward exactly."""
    N, C, H, W = x_nchw.shape
    x_flat = x_nchw.reshape(N, C, H * W)                        # (N, C, S)
    logits = jnp.einsum("kc,ncs->nks", conv_w, x_flat) + conv_b[None, :, None]
    a = jax.nn.softmax(logits, axis=1)                          # (N, K, S)
    vlad = jnp.einsum("nks,ncs->nkc", a, x_flat) \
        - centroids[None] * jnp.sum(a, axis=-1)[..., None]      # (N, K, C)
    vlad = vlad.reshape(N, -1)
    norm = jnp.maximum(jnp.linalg.norm(vlad, axis=1, keepdims=True), 1e-12)
    return vlad / norm


if __name__ == "__main__":
    # Small shapes consistent with the module (num_clusters=K, dim=C).  C is a
    # multiple of 128 (real NetVLAD: 512) so stores are lane-dense.  H=W=14
    # (real conv5 feature map) gives S=196, which is NOT a multiple of 128 and
    # exercises the masked ragged-tail tile; N=3 with bn=2 exercises the
    # batch-padding path.
    N, C, H, W = 3, 128, 14, 14
    K = 8

    key = jax.random.PRNGKey(0)
    kx, kw, kb, kc = jax.random.split(key, 4)
    x = jax.random.normal(kx, (N, C, H, W), dtype=jnp.float32)
    conv_w = 0.1 * jax.random.normal(kw, (K, C), dtype=jnp.float32)  # (K,C,1,1) squeezed
    conv_b = 0.1 * jax.random.normal(kb, (K,), dtype=jnp.float32)
    centroids = jax.random.uniform(kc, (K, C), dtype=jnp.float32)    # torch.rand

    ref = netvlad_reference(x, conv_w, conv_b, centroids)

    # Exact (f32-compute) path: tight tolerance vs the reference.
    out_f32 = netvlad_forward(x, conv_w, conv_b, centroids,
                              s_tile=128, bn=2, compute_dtype=jnp.float32)
    out_f32 = jax.block_until_ready(out_f32)
    assert out_f32.shape == (N, K * C)
    assert jnp.allclose(out_f32, ref, atol=1e-4, rtol=1e-4), "f32 mismatch vs reference"

    # Production (bf16-compute, f32-accumulate) path: ~1e-3-level relative error.
    out_bf16 = netvlad_forward(x, conv_w, conv_b, centroids,
                               s_tile=128, bn=2, compute_dtype=jnp.bfloat16)
    out_bf16 = jax.block_until_ready(out_bf16)
    assert out_bf16.shape == (N, K * C)
    assert jnp.allclose(out_bf16, ref, atol=5e-3, rtol=5e-2), "bf16 mismatch vs reference"

    print("KERNEL_OK")
</pallas_src>

<mosaic_0001>
module attributes {stable_mosaic.version = 11 : i64} {
  func.func @netvlad_kernel(%arg0: i32, %arg1: i32, %arg2: memref<2x128x128xf32, #tpu.memory_space<vmem>>, %arg3: memref<8x128xf32, #tpu.memory_space<vmem>>, %arg4: memref<8x1xf32, #tpu.memory_space<vmem>>, %arg5: memref<8x128xf32, #tpu.memory_space<vmem>>, %arg6: memref<2x8x128xf32, #tpu.memory_space<vmem>>, %arg7: memref<2x8x128xf32, #tpu.memory_space<vmem>>, %arg8: memref<2x8x1xf32, #tpu.memory_space<vmem>>) attributes {dimension_semantics = [#tpu.dimension_semantics<parallel>, #tpu.dimension_semantics<arbitrary>], iteration_bounds = array<i64: 2, 2>, scalar_prefetch = 0 : i64, scratch_operands = 2 : i64, tpu.core_type = #tpu.core_type<tc>, window_params = [{transform_indices = @transform_0, window_bounds = array<i64: 2, 128, 128>}, {pipeline_mode = #tpu.pipeline_mode<synchronous>, transform_indices = @transform_1, window_bounds = array<i64: 8, 128>}, {pipeline_mode = #tpu.pipeline_mode<synchronous>, transform_indices = @transform_2, window_bounds = array<i64: 8, 1>}, {pipeline_mode = #tpu.pipeline_mode<synchronous>, transform_indices = @transform_3, window_bounds = array<i64: 8, 128>}, {transform_indices = @transform_4, window_bounds = array<i64: 2, 8, 128>}]} {
    %c0_i32 = arith.constant 0 : i32
    %0 = arith.cmpi eq, %arg1, %c0_i32 : i32
    %1 = arith.extui %0 : i1 to i32
    %c0_i32_0 = arith.constant 0 : i32
    %2 = arith.cmpi ne, %1, %c0_i32_0 : i32
    scf.if %2 {
      %cst_45 = arith.constant 0.000000e+00 : f32
      %90 = vector.broadcast %cst_45 : f32 to vector<2x8x128xf32>
      %c0_46 = arith.constant 0 : index
      %c0_47 = arith.constant 0 : index
      %c0_48 = arith.constant 0 : index
      %91 = vector.load %arg7[%c0_46, %c0_47, %c0_48] : memref<2x8x128xf32, #tpu.memory_space<vmem>>, vector<2x8x128xf32>
      tpu.vector_store %arg7[%c0_46, %c0_47, %c0_48], %90 {strides = array<i32>} : memref<2x8x128xf32, #tpu.memory_space<vmem>>, vector<2x8x128xf32>,
      %cst_49 = arith.constant 0.000000e+00 : f32
      %92 = vector.broadcast %cst_49 : f32 to vector<2x8x1xf32>
      %c0_50 = arith.constant 0 : index
      %c0_51 = arith.constant 0 : index
      %c0_52 = arith.constant 0 : index
      %93 = vector.load %arg8[%c0_50, %c0_51, %c0_52] : memref<2x8x1xf32, #tpu.memory_space<vmem>>, vector<2x8x1xf32>
      tpu.vector_store %arg8[%c0_50, %c0_51, %c0_52], %92 {strides = array<i32>} : memref<2x8x1xf32, #tpu.memory_space<vmem>>, vector<2x8x1xf32>,
    } else {
    }
    %c0 = arith.constant 0 : index
    %c0_1 = arith.constant 0 : index
    %3 = vector.load %arg3[%c0, %c0_1] : memref<8x128xf32, #tpu.memory_space<vmem>>, vector<8x128xf32>
    %c0_2 = arith.constant 0 : index
    %c0_3 = arith.constant 0 : index
    %4 = vector.load %arg4[%c0_2, %c0_3] : memref<8x1xf32, #tpu.memory_space<vmem>>, vector<8x1xf32>
    %5 = tpu.iota {dimensions = array<i32: 1>} : vector<1x128xi32>
    %c128_i32 = arith.constant 128 : i32
    %6 = arith.muli %arg1, %c128_i32 : i32
    %7 = vector.broadcast %6 : i32 to vector<1x128xi32>
    %8 = arith.addi %5, %7 : vector<1x128xi32>
    %c196_i32 = arith.constant 196 : i32
    %9 = vector.broadcast %c196_i32 : i32 to vector<1x128xi32>
    %10 = arith.cmpi slt, %8, %9 : vector<1x128xi32>
    %11 = arith.extui %10 : vector<1x128xi1> to vector<1x128xi32>
    %12 = arith.sitofp %11 : vector<1x128xi32> to vector<1x128xf32>
    %c0_4 = arith.constant 0 : index
    %c0_5 = arith.constant 0 : index
    %c0_6 = arith.constant 0 : index
    %13 = vector.load %arg2[%c0_4, %c0_5, %c0_6] : memref<2x128x128xf32, #tpu.memory_space<vmem>>, vector<1x128x128xf32>
    %14 = vector.shape_cast %13 : vector<1x128x128xf32> to vector<128x128xf32>
    %c0_i32_7 = arith.constant 0 : i32
    %15 = arith.sitofp %c0_i32_7 : i32 to f32
    %16 = vector.shape_cast %10 : vector<1x128xi1> to vector<1x128xi1>
    %17 = vector.broadcast %16 : vector<1x128xi1> to vector<128x128xi1>
    %18 = vector.broadcast %15 : f32 to vector<128x128xf32>
    %19 = arith.select %17, %14, %18 : vector<128x128xi1>, vector<128x128xf32>
    %cst = arith.constant dense<0.000000e+00> : vector<8x128xf32>
    %20 = tpu.matmul %3, %19, %cst {dimension_numbers = #tpu.dot_dimension_numbers<[1], [0], [0], [1], [0, 0, 1, 1], [], []>} : vector<8x128xf32>, vector<128x128xf32>, vector<8x128xf32> -> vector<8x128xf32>
    %21 = vector.broadcast %4 : vector<8x1xf32> to vector<8x128xf32>
    %22 = arith.addf %20, %21 : vector<8x128xf32>
    %cst_8 = arith.constant dense<0xFF800000> : vector<128xf32>
    %23 = vector.multi_reduction <maximumf>, %22, %cst_8 [0] : vector<8x128xf32> to vector<128xf32>
    %24 = vector.shape_cast %23 : vector<128xf32> to vector<1x128xf32>
    %25 = vector.broadcast %24 : vector<1x128xf32> to vector<8x128xf32>
    %26 = arith.subf %22, %25 : vector<8x128xf32>
    %27 = math.exp %26 : vector<8x128xf32>
    %cst_9 = arith.constant dense<0.000000e+00> : vector<128xf32>
    %28 = vector.multi_reduction <add>, %27, %cst_9 [0] : vector<8x128xf32> to vector<128xf32>
    %29 = vector.shape_cast %28 : vector<128xf32> to vector<1x128xf32>
    %30 = tpu.reciprocal %29 : vector<1x128xf32> -> vector<1x128xf32>
    %31 = vector.broadcast %30 : vector<1x128xf32> to vector<8x128xf32>
    %32 = arith.mulf %27, %31 : vector<8x128xf32>
    %c0_10 = arith.constant 0 : index
    %c0_11 = arith.constant 0 : index
    %c0_12 = arith.constant 0 : index
    %33 = vector.load %arg7[%c0_10, %c0_11, %c0_12] : memref<2x8x128xf32, #tpu.memory_space<vmem>>, vector<1x8x128xf32>
    %34 = vector.shape_cast %33 : vector<1x8x128xf32> to vector<8x128xf32>
    %cst_13 = arith.constant dense<0.000000e+00> : vector<8x128xf32>
    %35 = tpu.matmul %32, %19, %cst_13 {dimension_numbers = #tpu.dot_dimension_numbers<[1], [1], [0], [0], [0, 0, 1, 0], [], []>} : vector<8x128xf32>, vector<128x128xf32>, vector<8x128xf32> -> vector<8x128xf32>
    %36 = arith.addf %34, %35 : vector<8x128xf32>
    %c0_14 = arith.constant 0 : index
    %c0_15 = arith.constant 0 : index
    %c0_16 = arith.constant 0 : index
    %37 = vector.load %arg7[%c0_14, %c0_15, %c0_16] : memref<2x8x128xf32, #tpu.memory_space<vmem>>, vector<1x8x128xf32>
    %38 = vector.shape_cast %37 : vector<1x8x128xf32> to vector<8x128xf32>
    %39 = vector.shape_cast %36 : vector<8x128xf32> to vector<1x8x128xf32>
    tpu.vector_store %arg7[%c0_14, %c0_15, %c0_16], %39 {strides = array<i32>} : memref<2x8x128xf32, #tpu.memory_space<vmem>>, vector<1x8x128xf32>,
    %40 = vector.broadcast %12 : vector<1x128xf32> to vector<8x128xf32>
    %41 = arith.mulf %32, %40 : vector<8x128xf32>
    %c0_17 = arith.constant 0 : index
    %c0_18 = arith.constant 0 : index
    %c0_19 = arith.constant 0 : index
    %42 = vector.load %arg8[%c0_17, %c0_18, %c0_19] : memref<2x8x1xf32, #tpu.memory_space<vmem>>, vector<1x8x1xf32>
    %43 = vector.shape_cast %42 : vector<1x8x1xf32> to vector<8x1xf32>
    %cst_20 = arith.constant dense<0.000000e+00> : vector<8xf32>
    %44 = vector.multi_reduction <add>, %41, %cst_20 [1] : vector<8x128xf32> to vector<8xf32>
    %45 = vector.shape_cast %44 : vector<8xf32> to vector<8x1xf32>
    %46 = arith.addf %43, %45 : vector<8x1xf32>
    %c0_21 = arith.constant 0 : index
    %c0_22 = arith.constant 0 : index
    %c0_23 = arith.constant 0 : index
    %47 = vector.load %arg8[%c0_21, %c0_22, %c0_23] : memref<2x8x1xf32, #tpu.memory_space<vmem>>, vector<1x8x1xf32>
    %48 = vector.shape_cast %47 : vector<1x8x1xf32> to vector<8x1xf32>
    %49 = vector.shape_cast %46 : vector<8x1xf32> to vector<1x8x1xf32>
    tpu.vector_store %arg8[%c0_21, %c0_22, %c0_23], %49 {strides = array<i32>} : memref<2x8x1xf32, #tpu.memory_space<vmem>>, vector<1x8x1xf32>,
    %c1 = arith.constant 1 : index
    %c0_24 = arith.constant 0 : index
    %c0_25 = arith.constant 0 : index
    %50 = vector.load %arg2[%c1, %c0_24, %c0_25] : memref<2x128x128xf32, #tpu.memory_space<vmem>>, vector<1x128x128xf32>
    %51 = vector.shape_cast %50 : vector<1x128x128xf32> to vector<128x128xf32>
    %c0_i32_26 = arith.constant 0 : i32
    %52 = arith.sitofp %c0_i32_26 : i32 to f32
    %53 = vector.shape_cast %10 : vector<1x128xi1> to vector<1x128xi1>
    %54 = vector.broadcast %53 : vector<1x128xi1> to vector<128x128xi1>
    %55 = vector.broadcast %52 : f32 to vector<128x128xf32>
    %56 = arith.select %54, %51, %55 : vector<128x128xi1>, vector<128x128xf32>
    %cst_27 = arith.constant dense<0.000000e+00> : vector<8x128xf32>
    %57 = tpu.matmul %3, %56, %cst_27 {dimension_numbers = #tpu.dot_dimension_numbers<[1], [0], [0], [1], [0, 0, 1, 1], [], []>} : vector<8x128xf32>, vector<128x128xf32>, vector<8x128xf32> -> vector<8x128xf32>
    %58 = vector.broadcast %4 : vector<8x1xf32> to vector<8x128xf32>
    %59 = arith.addf %57, %58 : vector<8x128xf32>
    %cst_28 = arith.constant dense<0xFF800000> : vector<128xf32>
    %60 = vector.multi_reduction <maximumf>, %59, %cst_28 [0] : vector<8x128xf32> to vector<128xf32>
    %61 = vector.shape_cast %60 : vector<128xf32> to vector<1x128xf32>
    %62 = vector.broadcast %61 : vector<1x128xf32> to vector<8x128xf32>
    %63 = arith.subf %59, %62 : vector<8x128xf32>
    %64 = math.exp %63 : vector<8x128xf32>
    %cst_29 = arith.constant dense<0.000000e+00> : vector<128xf32>
    %65 = vector.multi_reduction <add>, %64, %cst_29 [0] : vector<8x128xf32> to vector<128xf32>
    %66 = vector.shape_cast %65 : vector<128xf32> to vector<1x128xf32>
    %67 = tpu.reciprocal %66 : vector<1x128xf32> -> vector<1x128xf32>
    %68 = vector.broadcast %67 : vector<1x128xf32> to vector<8x128xf32>
    %69 = arith.mulf %64, %68 : vector<8x128xf32>
    %c1_30 = arith.constant 1 : index
    %c0_31 = arith.constant 0 : index
    %c0_32 = arith.constant 0 : index
    %70 = vector.load %arg7[%c1_30, %c0_31, %c0_32] : memref<2x8x128xf32, #tpu.memory_space<vmem>>, vector<1x8x128xf32>
    %71 = vector.shape_cast %70 : vector<1x8x128xf32> to vector<8x128xf32>
    %cst_33 = arith.constant dense<0.000000e+00> : vector<8x128xf32>
    %72 = tpu.matmul %69, %56, %cst_33 {dimension_numbers = #tpu.dot_dimension_numbers<[1], [1], [0], [0], [0, 0, 1, 0], [], []>} : vector<8x128xf32>, vector<128x128xf32>, vector<8x128xf32> -> vector<8x128xf32>
    %73 = arith.addf %71, %72 : vector<8x128xf32>
    %c1_34 = arith.constant 1 : index
    %c0_35 = arith.constant 0 : index
    %c0_36 = arith.constant 0 : index
    %74 = vector.load %arg7[%c1_34, %c0_35, %c0_36] : memref<2x8x128xf32, #tpu.memory_space<vmem>>, vector<1x8x128xf32>
    %75 = vector.shape_cast %74 : vector<1x8x128xf32> to vector<8x128xf32>
    %76 = vector.shape_cast %73 : vector<8x128xf32> to vector<1x8x128xf32>
    tpu.vector_store %arg7[%c1_34, %c0_35, %c0_36], %76 {strides = array<i32>} : memref<2x8x128xf32, #tpu.memory_space<vmem>>, vector<1x8x128xf32>,
    %77 = vector.broadcast %12 : vector<1x128xf32> to vector<8x128xf32>
    %78 = arith.mulf %69, %77 : vector<8x128xf32>
    %c1_37 = arith.constant 1 : index
    %c0_38 = arith.constant 0 : index
    %c0_39 = arith.constant 0 : index
    %79 = vector.load %arg8[%c1_37, %c0_38, %c0_39] : memref<2x8x1xf32, #tpu.memory_space<vmem>>, vector<1x8x1xf32>
    %80 = vector.shape_cast %79 : vector<1x8x1xf32> to vector<8x1xf32>
    %cst_40 = arith.constant dense<0.000000e+00> : vector<8xf32>
    %81 = vector.multi_reduction <add>, %78, %cst_40 [1] : vector<8x128xf32> to vector<8xf32>
    %82 = vector.shape_cast %81 : vector<8xf32> to vector<8x1xf32>
    %83 = arith.addf %80, %82 : vector<8x1xf32>
    %c1_41 = arith.constant 1 : index
    %c0_42 = arith.constant 0 : index
    %c0_43 = arith.constant 0 : index
    %84 = vector.load %arg8[%c1_41, %c0_42, %c0_43] : memref<2x8x1xf32, #tpu.memory_space<vmem>>, vector<1x8x1xf32>
    %85 = vector.shape_cast %84 : vector<1x8x1xf32> to vector<8x1xf32>
    %86 = vector.shape_cast %83 : vector<8x1xf32> to vector<1x8x1xf32>
    tpu.vector_store %arg8[%c1_41, %c0_42, %c0_43], %86 {strides = array<i32>} : memref<2x8x1xf32, #tpu.memory_space<vmem>>, vector<1x8x1xf32>,
    %c1_i32 = arith.constant 1 : i32
    %87 = arith.cmpi eq, %arg1, %c1_i32 : i32
    %88 = arith.extui %87 : i1 to i32
    %c0_i32_44 = arith.constant 0 : i32
    %89 = arith.cmpi ne, %88, %c0_i32_44 : i32
    scf.if %89 {
      %c0_45 = arith.constant 0 : index
      %c0_46 = arith.constant 0 : index
      %90 = vector.load %arg5[%c0_45, %c0_46] : memref<8x128xf32, #tpu.memory_space<vmem>>, vector<8x128xf32>
      %c0_47 = arith.constant 0 : index
      %c0_48 = arith.constant 0 : index
      %c0_49 = arith.constant 0 : index
      %91 = vector.load %arg7[%c0_47, %c0_48, %c0_49] : memref<2x8x128xf32, #tpu.memory_space<vmem>>, vector<1x8x128xf32>
      %92 = vector.shape_cast %91 : vector<1x8x128xf32> to vector<8x128xf32>
      %c0_50 = arith.constant 0 : index
      %c0_51 = arith.constant 0 : index
      %c0_52 = arith.constant 0 : index
      %93 = vector.load %arg8[%c0_50, %c0_51, %c0_52] : memref<2x8x1xf32, #tpu.memory_space<vmem>>, vector<1x8x1xf32>
      %94 = vector.shape_cast %93 : vector<1x8x1xf32> to vector<8x1xf32>
      %95 = vector.broadcast %94 : vector<8x1xf32> to vector<8x128xf32>
      %96 = arith.mulf %90, %95 : vector<8x128xf32>
      %97 = arith.subf %92, %96 : vector<8x128xf32>
      %98 = arith.mulf %97, %97 : vector<8x128xf32>
      %99 = vector.shape_cast %98 : vector<8x128xf32> to vector<1x8x128xf32>
      %cst_53 = arith.constant dense<0.000000e+00> : vector<1xf32>
      %100 = vector.multi_reduction <add>, %99, %cst_53 [1, 2] : vector<1x8x128xf32> to vector<1xf32>
      %101 = vector.shape_cast %100 : vector<1xf32> to vector<1x1x1xf32>
      %102 = vector.extract %101[0, 0, 0] : f32 from vector<1x1x1xf32>
      %cst_54 = arith.constant 1.000000e-24 : f32
      %103 = arith.maximumf %102, %cst_54 : f32
      %104 = math.rsqrt %103 : f32
      %105 = vector.broadcast %104 : f32 to vector<8x128xf32>
      %106 = arith.mulf %97, %105 : vector<8x128xf32>
      %c0_55 = arith.constant 0 : index
      %c0_56 = arith.constant 0 : index
      %c0_57 = arith.constant 0 : index
      %107 = vector.load %arg6[%c0_55, %c0_56, %c0_57] : memref<2x8x128xf32, #tpu.memory_space<vmem>>, vector<1x8x128xf32>
      %108 = vector.shape_cast %107 : vector<1x8x128xf32> to vector<8x128xf32>
      %109 = vector.shape_cast %106 : vector<8x128xf32> to vector<1x8x128xf32>
      tpu.vector_store %arg6[%c0_55, %c0_56, %c0_57], %109 {strides = array<i32>} : memref<2x8x128xf32, #tpu.memory_space<vmem>>, vector<1x8x128xf32>,
      %c1_58 = arith.constant 1 : index
      %c0_59 = arith.constant 0 : index
      %c0_60 = arith.constant 0 : index
      %110 = vector.load %arg7[%c1_58, %c0_59, %c0_60] : memref<2x8x128xf32, #tpu.memory_space<vmem>>, vector<1x8x128xf32>
      %111 = vector.shape_cast %110 : vector<1x8x128xf32> to vector<8x128xf32>
      %c1_61 = arith.constant 1 : index
      %c0_62 = arith.constant 0 : index
      %c0_63 = arith.constant 0 : index
      %112 = vector.load %arg8[%c1_61, %c0_62, %c0_63] : memref<2x8x1xf32, #tpu.memory_space<vmem>>, vector<1x8x1xf32>
      %113 = vector.shape_cast %112 : vector<1x8x1xf32> to vector<8x1xf32>
      %114 = vector.broadcast %113 : vector<8x1xf32> to vector<8x128xf32>
      %115 = arith.mulf %90, %114 : vector<8x128xf32>
      %116 = arith.subf %111, %115 : vector<8x128xf32>
      %117 = arith.mulf %116, %116 : vector<8x128xf32>
      %118 = vector.shape_cast %117 : vector<8x128xf32> to vector<1x8x128xf32>
      %cst_64 = arith.constant dense<0.000000e+00> : vector<1xf32>
      %119 = vector.multi_reduction <add>, %118, %cst_64 [1, 2] : vector<1x8x128xf32> to vector<1xf32>
      %120 = vector.shape_cast %119 : vector<1xf32> to vector<1x1x1xf32>
      %121 = vector.extract %120[0, 0, 0] : f32 from vector<1x1x1xf32>
      %cst_65 = arith.constant 1.000000e-24 : f32
      %122 = arith.maximumf %121, %cst_65 : f32
      %123 = math.rsqrt %122 : f32
      %124 = vector.broadcast %123 : f32 to vector<8x128xf32>
      %125 = arith.mulf %116, %124 : vector<8x128xf32>
      %c1_66 = arith.constant 1 : index
      %c0_67 = arith.constant 0 : index
      %c0_68 = arith.constant 0 : index
      %126 = vector.load %arg6[%c1_66, %c0_67, %c0_68] : memref<2x8x128xf32, #tpu.memory_space<vmem>>, vector<1x8x128xf32>
      %127 = vector.shape_cast %126 : vector<1x8x128xf32> to vector<8x128xf32>
      %128 = vector.shape_cast %125 : vector<8x128xf32> to vector<1x8x128xf32>
      tpu.vector_store %arg6[%c1_66, %c0_67, %c0_68], %128 {strides = array<i32>} : memref<2x8x128xf32, #tpu.memory_space<vmem>>, vector<1x8x128xf32>,
    } else {
    }
    return
  }
  func.func @transform_0(%arg0: i32, %arg1: i32) -> (i32, i32, i32) {
    %c0_i32 = arith.constant 0 : i32
    %c0_i32_0 = arith.constant 0 : i32
    return %arg0, %c0_i32, %arg1 : i32, i32, i32
  }
  func.func @transform_1(%arg0: i32, %arg1: i32) -> (i32, i32) {
    %c0_i32 = arith.constant 0 : i32
    %c0_i32_0 = arith.constant 0 : i32
    %c0_i32_1 = arith.constant 0 : i32
    return %c0_i32, %c0_i32_0 : i32, i32
  }
  func.func @transform_2(%arg0: i32, %arg1: i32) -> (i32, i32) {
    %c0_i32 = arith.constant 0 : i32
    %c0_i32_0 = arith.constant 0 : i32
    %c0_i32_1 = arith.constant 0 : i32
    return %c0_i32, %c0_i32_0 : i32, i32
  }
  func.func @transform_3(%arg0: i32, %arg1: i32) -> (i32, i32) {
    %c0_i32 = arith.constant 0 : i32
    %c0_i32_0 = arith.constant 0 : i32
    %c0_i32_1 = arith.constant 0 : i32
    return %c0_i32, %c0_i32_0 : i32, i32
  }
  func.func @transform_4(%arg0: i32, %arg1: i32) -> (i32, i32, i32) {
    %c0_i32 = arith.constant 0 : i32
    %c0_i32_0 = arith.constant 0 : i32
    %c0_i32_1 = arith.constant 0 : i32
    return %arg0, %c0_i32, %c0_i32_0 : i32, i32, i32
  }
}

</mosaic_0001>

<bundles_post_ra>
// kernel: tpu_custom_call.1
= control target key start
LH: loop header
LB: loop body
LE: loop exit
PB: predicated region body
PF: predicated region fallthrough
CT: control target
= control target key end

     0   :  { %9 = vsyncpa [#allocation6], 0  ;;  %s2096_s0 = inlined_call_operand.vmem [shape: f32[4,128,196], index: 0, kind: input, shape index: {}]   ;;  %s2097_s1 = inlined_call_operand.vmem [shape: f32[8,128], index: 1, kind: input, shape index: {}]   ;;  %s2098_s2 = inlined_call_operand.vmem [shape: f32[8,1], index: 2, kind: input, shape index: {}]   ;;  %s2099_s3 = inlined_call_operand.vmem [shape: f32[8,128], index: 3, kind: input, shape index: {}]   ;;  %s2100_s4 = inlined_call_operand.hbm [shape: f32[4,8,128], index: 4, kind: output, shape index: {}]  }
   0x1   :  { %11 = vsyncpa [#allocation6 + $0x1], 0  ;;  %s1655_s15 = smov 0   ;;  %s1657_s16 = smov 0  }
   0x2   :  { %s1659_s17 = smov 0   ;;  %s1661_s18 = smov 0  }
   0x3   :  { %s1663_s19 = smov 0   ;;  %s1665_s20 = smov 0  }
   0x4   :  { %s1667_s21 = smov 0   ;;  %s1669_s22 = smov 0  }
   0x5   :  { %s1671_s23 = smov 0   ;;  %s1673_s24 = smov 0  }
   0x6 LB: > { %s951_s25 = sadd.s32 4294967295, %s1618_s24   ;;  %s952_s26 = sadd.s32 4294967294, %s1618_s24   ;;  %s1618_s24 = sphi %s1673_s24, %s17_s24   ;;  %s1614_s23 = sphi %s1671_s23, %s2114_s23   ;;  %s1610_s22 = sphi %s1669_s22, %s2113_s22   ;;  %s1606_s21 = sphi %s1667_s21, %s2112_s21   ;;  %s1602_s20 = sphi %s1665_s20, %s2111_s20   ;;  %s1598_s19 = sphi %s1663_s19, %s2110_s19   ;;  %s1594_s18 = sphi %s1661_s18, %s2109_s18   ;;  %s1590_s17 = sphi %s1659_s17, %s2108_s17   ;;  %s1586_s16 = sphi %s1657_s16, %s2107_s16   ;;  %s1582_s15 = sphi %s1655_s15, %s2106_s15  }
   0x7   : > { %s26_s27 = sadd.s32 1, %s1610_s22  ;;  %s29_s28 = sadd.s32 1, %s1614_s23 }
   0x8   : > { %p27_p0 = scmp.ge.s32.totalorder %s26_s27, 2  ;;  %s38_s29 = sadd.s32 1, %s1598_s19 }
   0x9   : > { %p45_p1 = scmp.ne.s32.totalorder %s1598_s19, %s1594_s18  ;;  %p46_p2 = scmp.eq.s32.totalorder %s1618_s24, 0 }
   0xa   : > { %s2116_s27 = smov (%p27_p0, %s26_s27), 0  ;;  %s2118_s28 = smov (!%p27_p0, %s29_s28), %s1614_s23 }
   0xb   : > { %s34_s30 = ssub.s32 %s1610_s22, %s2116_s27  ;;  %p1718_p3 = por %p46_p2, %p45_p1 }
   0xc   : > { %p31_p4 = scmp.ge.s32.totalorder %s2118_s28, 2  ;;  %s127_s6 = sadd.s32 1, %s1590_s17 }
   0xd   : > { %p137_p5 = scmp.ne.s32.totalorder %s1590_s17, %s1586_s16  ;;  %p138_p6 = scmp.eq.s32.totalorder %s951_s25, 3 }
   0xe   : > { %s2120_s28 = smov (%p31_p4, %s2118_s28), 0  ;;  %p143_p8 = scmp.ne.s32.totalorder %s1586_s16, %s1582_s15 }
   0xf   : > { %p1727_p7 = por %p138_p6, %p137_p5  ;;  %s33_s8 = ssub.s32 %s1614_s23, %s2120_s28 }
  0x10   : > { %p144_p9 = scmp.eq.s32.totalorder %s952_s26, 3  ;;  %s35_s9 = sor.u32 %s34_s30, %s33_s8 }
  0x11   : > { %p125_p10 = scmp.eq.s32.totalorder %s33_s8, 0  ;;  %p36_p11 = scmp.eq.s32.totalorder %s35_s9, 0 }
  0x12   : > { %p1735_p12 = por %p144_p9, %p143_p8  ;;  %p954_p13 = scmp.ge.s32.totalorder %s1618_s24, 4 }
  0x13   : > { %s1740_s11 = scalar_select %p125_p10, %s1590_s17, %s127_s6  }
  0x14   : > { %s1743_s12 = scalar_select %p36_p11, %s1598_s19, %s38_s29  }
  0x15   : > { %169 = sbr.rel (%p954_p13) target bundleno = 50 (0x32), region = 28 }
  0x1c   : > { %172 = sbr.rel (!%p1718_p3) target bundleno = 50 (0x32), region = 32  ;;  %s174_s13 = sand.u32 (%p1718_p3), 1, %s1598_s19  }
  0x1d   : > { %s1052_s14 = sshll.u32 (%p1718_p3), %s1614_s23, 6  ;;  %s955_s25 = sshll.u32 (%p1718_p3), %s174_s13, 8 }
  0x1e   : > { %s179_s26 = sadd.s32 (%p1718_p3), %s1610_s22, %s1052_s14  ;;  %s1759_s29 = scalar_lea.vmem (%p1718_p3), [#allocation4], %s955_s25 }
  0x1f   : > { %s958_s30 = sshll.u32 (%p1718_p3), %s179_s26, 3 }
  0x20   : > { %s1754_s6 = scalar_lea.vmem (%p1718_p3), %s2096_s0, %s958_s30 }
  0x21   : > { %v271_v0 = vld [vmem:[%s1754_s6] sm:$0xff] (%p1718_p3)  ;;  %v273_v1 = vld [vmem:[%s1754_s6 + $0x10] sm:$0xff] (%p1718_p3) }
  0x22   : > { %v275_v2 = vld [vmem:[%s1754_s6 + $0x20] sm:$0xff] (%p1718_p3)  ;;  %272 = vst [vmem:[%s1759_s29] sm:$0xff] (%p1718_p3), %v271_v0  ;;  %274 = vst [vmem:[%s1759_s29 + $0x8] sm:$0xff] (%p1718_p3), %v273_v1  ;;  %v277_v3 = vld [vmem:[%s1754_s6 + $0x30] sm:$0xff] (%p1718_p3) }
  0x23   : > { %276 = vst [vmem:[%s1759_s29 + $0x10] sm:$0xff] %v275_v2  ;;  %v279_v4 = vld [vmem:[%s1754_s6 + $0x40] sm:$0xff]  ;;  %v281_v5 = vld [vmem:[%s1754_s6 + $0x50] sm:$0xff]  ;;  %278 = vst [vmem:[%s1759_s29 + $0x18] sm:$0xff] %v277_v3 }
  0x24   : > { %280 = vst [vmem:[%s1759_s29 + $0x20] sm:$0xff] %v279_v4  ;;  %282 = vst [vmem:[%s1759_s29 + $0x28] sm:$0xff] %v281_v5  ;;  %v283_v6 = vld [vmem:[%s1754_s6 + $0x60] sm:$0xff]  ;;  %v285_v7 = vld [vmem:[%s1754_s6 + $0x70] sm:$0xff] }
  0x25   : > { %v287_v8 = vld [vmem:[%s1754_s6 + $0x80] sm:$0xff]  ;;  %284 = vst [vmem:[%s1759_s29 + $0x30] sm:$0xff] %v283_v6  ;;  %286 = vst [vmem:[%s1759_s29 + $0x38] sm:$0xff] %v285_v7  ;;  %v289_v9 = vld [vmem:[%s1754_s6 + $0x90] sm:$0xff] }
  0x26   : > { %288 = vst [vmem:[%s1759_s29 + $0x40] sm:$0xff] %v287_v8  ;;  %v291_v10 = vld [vmem:[%s1754_s6 + $0xa0] sm:$0xff]  ;;  %v293_v11 = vld [vmem:[%s1754_s6 + $0xb0] sm:$0xff]  ;;  %290 = vst [vmem:[%s1759_s29 + $0x48] sm:$0xff] %v289_v9 }
  0x27   : > { %292 = vst [vmem:[%s1759_s29 + $0x50] sm:$0xff] %v291_v10  ;;  %294 = vst [vmem:[%s1759_s29 + $0x58] sm:$0xff] %v293_v11  ;;  %v295_v12 = vld [vmem:[%s1754_s6 + $0xc0] sm:$0xff]  ;;  %v297_v13 = vld [vmem:[%s1754_s6 + $0xd0] sm:$0xff] }
  0x28   : > { %v299_v14 = vld [vmem:[%s1754_s6 + $0xe0] sm:$0xff]  ;;  %296 = vst [vmem:[%s1759_s29 + $0x60] sm:$0xff] %v295_v12  ;;  %298 = vst [vmem:[%s1759_s29 + $0x68] sm:$0xff] %v297_v13  ;;  %v301_v15 = vld [vmem:[%s1754_s6 + $0xf0] sm:$0xff] }
  0x29   : > { %300 = vst [vmem:[%s1759_s29 + $0x70] sm:$0xff] %v299_v14  ;;  %v303_v16 = vld [vmem:[%s1754_s6 + $0x100] sm:$0xff]  ;;  %v305_v17 = vld [vmem:[%s1754_s6 + $0x110] sm:$0xff]  ;;  %302 = vst [vmem:[%s1759_s29 + $0x78] sm:$0xff] %v301_v15 }
  0x2a   : > { %304 = vst [vmem:[%s1759_s29 + $0x80] sm:$0xff] %v303_v16  ;;  %306 = vst [vmem:[%s1759_s29 + $0x88] sm:$0xff] %v305_v17  ;;  %v307_v18 = vld [vmem:[%s1754_s6 + $0x120] sm:$0xff]  ;;  %v309_v19 = vld [vmem:[%s1754_s6 + $0x130] sm:$0xff] }
  0x2b   : > { %v311_v20 = vld [vmem:[%s1754_s6 + $0x140] sm:$0xff]  ;;  %308 = vst [vmem:[%s1759_s29 + $0x90] sm:$0xff] %v307_v18  ;;  %310 = vst [vmem:[%s1759_s29 + $0x98] sm:$0xff] %v309_v19  ;;  %v313_v21 = vld [vmem:[%s1754_s6 + $0x150] sm:$0xff] }
  0x2c   : > { %312 = vst [vmem:[%s1759_s29 + $0xa0] sm:$0xff] %v311_v20  ;;  %v315_v22 = vld [vmem:[%s1754_s6 + $0x160] sm:$0xff]  ;;  %v317_v23 = vld [vmem:[%s1754_s6 + $0x170] sm:$0xff]  ;;  %314 = vst [vmem:[%s1759_s29 + $0xa8] sm:$0xff] %v313_v21 }
  0x2d   : > { %316 = vst [vmem:[%s1759_s29 + $0xb0] sm:$0xff] %v315_v22  ;;  %318 = vst [vmem:[%s1759_s29 + $0xb8] sm:$0xff] %v317_v23  ;;  %v319_v24 = vld [vmem:[%s1754_s6 + $0x180] sm:$0xff]  ;;  %v321_v25 = vld [vmem:[%s1754_s6 + $0x190] sm:$0xff] }
  0x2e   : > { %v323_v26 = vld [vmem:[%s1754_s6 + $0x1a0] sm:$0xff]  ;;  %320 = vst [vmem:[%s1759_s29 + $0xc0] sm:$0xff] %v319_v24  ;;  %322 = vst [vmem:[%s1759_s29 + $0xc8] sm:$0xff] %v321_v25  ;;  %v325_v27 = vld [vmem:[%s1754_s6 + $0x1b0] sm:$0xff] }
  0x2f   : > { %324 = vst [vmem:[%s1759_s29 + $0xd0] sm:$0xff] %v323_v26  ;;  %v327_v28 = vld [vmem:[%s1754_s6 + $0x1c0] sm:$0xff]  ;;  %v329_v29 = vld [vmem:[%s1754_s6 + $0x1d0] sm:$0xff]  ;;  %326 = vst [vmem:[%s1759_s29 + $0xd8] sm:$0xff] %v325_v27 }
  0x30   : > { %328 = vst [vmem:[%s1759_s29 + $0xe0] sm:$0xff] %v327_v28  ;;  %330 = vst [vmem:[%s1759_s29 + $0xe8] sm:$0xff] %v329_v29  ;;  %v331_v30 = vld [vmem:[%s1754_s6 + $0x1e0] sm:$0xff]  ;;  %v333_v31 = vld [vmem:[%s1754_s6 + $0x1f0] sm:$0xff] }
  0x31   : > { %332 = vst [vmem:[%s1759_s29 + $0xf0] sm:$0xff] %v331_v30  ;;  %334 = vst [vmem:[%s1759_s29 + $0xf8] sm:$0xff] %v333_v31 }
  0x32 PF: > { %p959_p0 = scmp.ge.s32.totalorder %s1618_s24, 1  ;;  %p339_p1 = scmp.lt.s32.totalorder %s1618_s24, 5 }
  0x34   : > { %p340_p2 = pnand %p959_p0, %p339_p1 }
  0x35   : > { %s346_s5 = sand.u32 (!%p340_p2), 1, %s1594_s18   ;;  %s368_s13 = sand.u32 (!%p340_p2), 1, %s1586_s16  }
  0x36   : > { %343 = sbr.rel (%p340_p2) target bundleno = 1021 (0x3fd), region = 70  ;;  %s960_s14 = sshll.u32 (!%p340_p2), %s346_s5, 8 }
  0x37   : > { %s961_s25 = sshll.u32 (!%p340_p2), %s368_s13, 4  ;;  %s1828_s26 = scalar_lea.vmem (!%p340_p2), [#allocation4], %s960_s14 }
  0x38   : > { %s1830_s30 = scalar_lea.vmem (!%p340_p2), [#allocation5], %s961_s25  ;;  %p962_p3 = scmp.ne.s32.totalorder (!%p340_p2), %s1602_s20, 0 }
  0x3d   : > { %376 = sbr.rel (%p962_p3) target bundleno = 68 (0x44), region = 78  ;;  %vm379_vm0 = vcmask (!%p962_p3), 7168   ;;  %v1620_v32 = vmov (!%p962_p3), 0.0  }
  0x3e   : > { %377 = vst [vmem:[#allocation2] sm:$0xff] (!%p962_p3), %v1620_v32  ;;  %378 = vst [vmem:[#allocation2 + $0x8] sm:$0xff] (!%p962_p3), %v1620_v32 }
  0x3f   : > { %380 = vst.msk [vmem:[#allocation3] sm:$0xff] (!%p962_p3), %vm379_vm0, %v1620_v32  ;;  %381 = vst.msk [vmem:[#allocation3 + $0x8] sm:$0xff] (!%p962_p3), %vm379_vm0, %v1620_v32 }
  0x44 PF: > { %v384_v33 = vlaneseq  ;;  %s963_s18 = sshll.u32 %s1602_s20, 7  ;;  %v392_v34 = vld [vmem:[%s1828_s26] sm:$0xff]  ;;  %v1621_v35 = vmov 0.0|0.0   ;;  %v393_v37 = vld [vmem:[%s1828_s26 + $0x8] sm:$0xff]  ;;  %vm1622_vm1 = vmmov 0   ;;  %v1623_v41 = vmov 0.0  }
  0x45   : > { %1262 = vmatprep.subr.bf16.mxu1 %v1621_v35  ;;  %1326 = vmatprep.subr.bf16.mxu0 %v1621_v35  ;;  %v387_v36 = vstv %s963_s18  ;;  %v997_v38 = vld [vmem:[%s1828_s26 + $0x80] sm:$0xff]  ;;  %v998_v39 = vld [vmem:[%s1828_s26 + $0x88] sm:$0xff]  ;;  %v1624_v42 = vmov 0   ;;  %v1846_v44 = vpack.c.bf16 %v393_v37, %v392_v34  ;;  %v394_v46 = vld [vmem:[%s1828_s26 + $0x10] sm:$0xff]  ;;  %vm595_vm4 = vcmask 7168   ;;  %p1045_p4 = scmp.ne.s32.totalorder %s1602_s20, 1 }
  0x46   : > { %v385_v40 = vand.u32 127, %v384_v33  ;;  %1154 = vmatprep.mubr.msk.f32.mxu1 %vm1622_vm1, %v1623_v41  ;;  %1224 = vmatprep.mubr.msk.f32.mxu0 %vm1622_vm1, %v1623_v41  ;;  %v1848_v45 = vpack.c.bf16 %v998_v39, %v997_v38  ;;  %v395_v47 = vld [vmem:[%s1828_s26 + $0x18] sm:$0xff]  ;;  %v999_v48 = vld [vmem:[%s1828_s26 + $0x90] sm:$0xff]  ;;  %v396_v53 = vld [vmem:[%s1828_s26 + $0x20] sm:$0xff]  ;;  %s1626_s25 = smov (!%p1045_p4), 1e-24  }
  0x47   : > { %1494 = vset.pattern.permute.xlu0 %v1624_v42  ;;  %v1000_v49 = vld [vmem:[%s1828_s26 + $0x98] sm:$0xff]  ;;  %v1868_v51 = vpack.c.bf16 %v395_v47, %v394_v46  ;;  %v397_v54 = vld [vmem:[%s1828_s26 + $0x28] sm:$0xff]  ;;  %v1001_v55 = vld [vmem:[%s1828_s26 + $0xa0] sm:$0xff] }
  0x48   : > { %v1844_v43 = vadd.s32 %v387_v36, %v385_v40  ;;  %v1870_v52 = vpack.c.bf16 %v1000_v49, %v999_v48  ;;  %v1002_v56 = vld [vmem:[%s1828_s26 + $0xa8] sm:$0xff]  ;;  %v383_v57 = vld [vmem:[%s2098_s2] sm:$0xff]  ;;  %v1887_v58 = vpack.c.bf16 %v397_v54, %v396_v53  ;;  %v398_v60 = vld [vmem:[%s1828_s26 + $0x30] sm:$0xff] }
  0x49   : > { %v1889_v59 = vpack.c.bf16 %v1002_v56, %v1001_v55  ;;  %v399_v61 = vld [vmem:[%s1828_s26 + $0x38] sm:$0xff]  ;;  %v1003_v62 = vld [vmem:[%s1828_s26 + $0xb0] sm:$0xff]  ;;  %427 = vperm.xlu0 %1494, %v383_v57   ;;  %v400_v2 = vld [vmem:[%s1828_s26 + $0x40] sm:$0xff] }
  0x4a   : > { %vm389_vm2 = vcmp.lt.s32.totalorder %v1844_v43, 196  ;;  %v1004_v63 = vld [vmem:[%s1828_s26 + $0xb8] sm:$0xff]  ;;  %v1903_v0 = vpack.c.bf16 %v399_v61, %v398_v60  ;;  %v401_v3 = vld [vmem:[%s1828_s26 + $0x48] sm:$0xff]  ;;  %v1005_v4 = vld [vmem:[%s1828_s26 + $0xc0] sm:$0xff] }
  0x4b   : > { %vm1858_vm3 = vmpackc.low %vm389_vm2, %vm389_vm2  ;;  %v1905_v1 = vpack.c.bf16 %v1004_v63, %v1003_v62  ;;  %v1006_v5 = vld [vmem:[%s1828_s26 + $0xc8] sm:$0xff]  ;;  %v1279_v6 = vpack.c.bf16 %v401_v3, %v400_v2  ;;  %v402_v8 = vld [vmem:[%s1828_s26 + $0x50] sm:$0xff]  ;;  %v964_v3 = vsel %vm389_vm2, 1.0, %v1623_v41 }
  0x4c   : > { %1265 = vmatpush3.bf16.msk.msra.mxu1 %vm1858_vm3, %v1846_v44  ;;  %1329 = vmatpush3.bf16.msk.msra.mxu0 %vm1858_vm3, %v1848_v45  ;;  %v1343_v7 = vpack.c.bf16 %v1006_v5, %v1005_v4  ;;  %v403_v9 = vld [vmem:[%s1828_s26 + $0x58] sm:$0xff]  ;;  %v1007_v10 = vld [vmem:[%s1828_s26 + $0xd0] sm:$0xff]  ;;  %v404_v14 = vld [vmem:[%s1828_s26 + $0x60] sm:$0xff] }
  0x4d   : > { %1266 = vmatprep.subr.bf16.mxu1 %v1621_v35  ;;  %1330 = vmatprep.subr.bf16.mxu0 %v1621_v35  ;;  %v1008_v11 = vld [vmem:[%s1828_s26 + $0xd8] sm:$0xff]  ;;  %v1283_v12 = vpack.c.bf16 %v403_v9, %v402_v8  ;;  %v405_v15 = vld [vmem:[%s1828_s26 + $0x68] sm:$0xff]  ;;  %v1009_v16 = vld [vmem:[%s1828_s26 + $0xe0] sm:$0xff] }
  0x4e   : > { %v1347_v13 = vpack.c.bf16 %v1008_v11, %v1007_v10  ;;  %v1010_v17 = vld [vmem:[%s1828_s26 + $0xe8] sm:$0xff]  ;;  %v1287_v18 = vpack.c.bf16 %v405_v15, %v404_v14  ;;  %v406_v20 = vld [vmem:[%s1828_s26 + $0x70] sm:$0xff]  ;;  %v407_v21 = vld [vmem:[%s1828_s26 + $0x78] sm:$0xff] }
  0x4f   : > { %v1351_v19 = vpack.c.bf16 %v1010_v17, %v1009_v16  ;;  %v1011_v22 = vld [vmem:[%s1828_s26 + $0xf0] sm:$0xff]  ;;  %v1012_v23 = vld [vmem:[%s1828_s26 + $0xf8] sm:$0xff]  ;;  %v1291_v24 = vpack.c.bf16 %v407_v21, %v406_v20  ;;  %v382_v26 = vld [vmem:[%s2097_s1] sm:$0xff] }
  0x50   : > { %1269 = vmatpush3.bf16.msk.msra.mxu1 %vm1858_vm3, %v1868_v51  ;;  %1333 = vmatpush3.bf16.msk.msra.mxu0 %vm1858_vm3, %v1870_v52  ;;  %v1355_v25 = vpack.c.bf16 %v1012_v23, %v1011_v22  ;;  %v591_v9 = vld [vmem:[#allocation3] sm:$0xff]  ;;  %v793_v10 = vld [vmem:[#allocation3 + $0x8] sm:$0xff]  ;;  %v517_v43 = vld [vmem:[#allocation2] sm:$0xff]  ;;  %v1625_v22 = vmov (!%p1045_p4), 0  }
  0x51   : > { %1270 = vmatprep.subr.bf16.mxu1 %v1621_v35  ;;  %1334 = vmatprep.subr.bf16.mxu0 %v1621_v35 }
  0x52   : > { %1503 = vset.pattern.permute.xlu0 (!%p1045_p4), %v1625_v22 }
  0x54   : > { %1273 = vmatpush3.bf16.msk.msra.mxu1 %vm1858_vm3, %v1887_v58  ;;  %1337 = vmatpush3.bf16.msk.msra.mxu0 %vm1858_vm3, %v1889_v59 }
  0x55   : > { %1274 = vmatprep.subr.bf16.mxu1 %v1621_v35  ;;  %1338 = vmatprep.subr.bf16.mxu0 %v1621_v35 }
  0x58   : > { %1277 = vmatpush3.bf16.msk.msra.mxu1 %vm1858_vm3, %v1903_v0  ;;  %1341 = vmatpush3.bf16.msk.msra.mxu0 %vm1858_vm3, %v1905_v1 }
  0x59   : > { %1278 = vmatprep.subr.bf16.mxu1 %v1621_v35  ;;  %1342 = vmatprep.subr.bf16.mxu0 %v1621_v35 }
  0x5c   : > { %1281 = vmatpush3.bf16.msk.msra.mxu1 %vm1858_vm3, %v1279_v6  ;;  %1345 = vmatpush3.bf16.msk.msra.mxu0 %vm1858_vm3, %v1343_v7 }
  0x5d   : > { %1282 = vmatprep.subr.bf16.mxu1 %v1621_v35  ;;  %1346 = vmatprep.subr.bf16.mxu0 %v1621_v35 }
  0x60   : > { %1285 = vmatpush3.bf16.msk.msra.mxu1 %vm1858_vm3, %v1283_v12  ;;  %1349 = vmatpush3.bf16.msk.msra.mxu0 %vm1858_vm3, %v1347_v13 }
  0x61   : > { %1286 = vmatprep.subr.bf16.mxu1 %v1621_v35  ;;  %1350 = vmatprep.subr.bf16.mxu0 %v1621_v35 }
  0x64   : > { %1289 = vmatpush3.bf16.msk.msra.mxu1 %vm1858_vm3, %v1287_v18  ;;  %1353 = vmatpush3.bf16.msk.msra.mxu0 %vm1858_vm3, %v1351_v19 }
  0x65   : > { %1290 = vmatprep.subr.bf16.mxu1 %v1621_v35  ;;  %1354 = vmatprep.subr.bf16.mxu0 %v1621_v35 }
  0x68   : > { %1293 = vmatpush3.bf16.msk.msra.mxu1 %vm1858_vm3, %v1291_v24  ;;  %1357 = vmatpush3.bf16.msk.msra.mxu0 %vm1858_vm3, %v1355_v25 }
  0x69   : > { %1294 = vmatprep.subr.bf16.mxu1 %v1621_v35  ;;  %1358 = vmatprep.subr.bf16.mxu0 %v1621_v35 }
  0x6b   : > { %1155 = vmatmul.mubr.f32.vlgmr.msra.gmra.mrb[0].mxu1 %v382_v26  ;;  %1225 = vmatmul.mubr.f32.vlgmr.msra.gmra.mrb[0].mxu0 %v382_v26 }
  0x6c   : > { %1189 = vmatprep.mubr.msk.f32.mxu1 %vm1622_vm1, %v1623_v41  ;;  %1259 = vmatprep.mubr.msk.f32.mxu0 %vm1622_vm1, %v1623_v41  ;;  %v718_v41 = vld [vmem:[#allocation2 + $0x8] sm:$0xff] }
  0x71   : > { %1297 = vmatpush3.bf16.xpose.msk.msra.mxu1 %vm1858_vm3, %v1846_v44  ;;  %1361 = vmatpush3.bf16.xpose.msk.msra.mxu0 %vm1858_vm3, %v1848_v45 }
  0x72   : > { %1298 = vmatprep.subr.bf16.mxu1 %v1621_v35  ;;  %1362 = vmatprep.subr.bf16.mxu0 %v1621_v35 }
  0x79   : > { %1301 = vmatpush3.bf16.xpose.msk.msra.mxu1 %vm1858_vm3, %v1868_v51  ;;  %1365 = vmatpush3.bf16.xpose.msk.msra.mxu0 %vm1858_vm3, %v1870_v52 }
  0x7a   : > { %1302 = vmatprep.subr.bf16.mxu1 %v1621_v35  ;;  %1366 = vmatprep.subr.bf16.mxu0 %v1621_v35 }
  0x81   : > { %1305 = vmatpush3.bf16.xpose.msk.msra.mxu1 %vm1858_vm3, %v1887_v58  ;;  %1369 = vmatpush3.bf16.xpose.msk.msra.mxu0 %vm1858_vm3, %v1889_v59 }
  0x82   : > { %1306 = vmatprep.subr.bf16.mxu1 %v1621_v35  ;;  %1370 = vmatprep.subr.bf16.mxu0 %v1621_v35 }
  0x89   : > { %1309 = vmatpush3.bf16.xpose.msk.msra.mxu1 %vm1858_vm3, %v1903_v0  ;;  %1373 = vmatpush3.bf16.xpose.msk.msra.mxu0 %vm1858_vm3, %v1905_v1 }
  0x8a   : > { %1310 = vmatprep.subr.bf16.mxu1 %v1621_v35  ;;  %1374 = vmatprep.subr.bf16.mxu0 %v1621_v35 }
  0x91   : > { %1313 = vmatpush3.bf16.xpose.msk.msra.mxu1 %vm1858_vm3, %v1279_v6  ;;  %1377 = vmatpush3.bf16.xpose.msk.msra.mxu0 %vm1858_vm3, %v1343_v7 }
  0x92   : > { %1314 = vmatprep.subr.bf16.mxu1 %v1621_v35  ;;  %1378 = vmatprep.subr.bf16.mxu0 %v1621_v35 }
  0x99   : > { %1317 = vmatpush3.bf16.xpose.msk.msra.mxu1 %vm1858_vm3, %v1283_v12  ;;  %1381 = vmatpush3.bf16.xpose.msk.msra.mxu0 %vm1858_vm3, %v1347_v13 }
  0x9a   : > { %1318 = vmatprep.subr.bf16.mxu1 %v1621_v35  ;;  %1382 = vmatprep.subr.bf16.mxu0 %v1621_v35 }
  0xa1   : > { %1321 = vmatpush3.bf16.xpose.msk.msra.mxu1 %vm1858_vm3, %v1287_v18  ;;  %1385 = vmatpush3.bf16.xpose.msk.msra.mxu0 %vm1858_vm3, %v1351_v19 }
  0xa2   : > { %1322 = vmatprep.subr.bf16.mxu1 %v1621_v35  ;;  %1386 = vmatprep.subr.bf16.mxu0 %v1621_v35 }
  0xa9   : > { %1325 = vmatpush3.bf16.xpose.msk.msra.mxu1 %vm1858_vm3, %v1291_v24  ;;  %1389 = vmatpush3.bf16.xpose.msk.msra.mxu0 %vm1858_vm3, %v1355_v25  ;;  %v802_v24 = vld [vmem:[%s2099_s3] sm:$0xff] (!%p1045_p4) }
  0xc8   : > { %v428_v27 = vpop.permute.xlu0 %427 }
 0x13e   : > { %v496_v28 = vpop.f32.mrb[0].mxu1  ;;  %v696_v29 = vpop.f32.mrb[0].mxu0 }
 0x13f   : > { %v497_v30 = vadd.f32 %v496_v28, %v428_v27  ;;  %v697_v31 = vadd.f32 %v696_v29, %v428_v27  ;;  %v1156_v32 = vpop.f32.mrb[1].mxu1  ;;  %v1226_v33 = vpop.f32.mrb[1].mxu0 }
 0x141   : > { %v500_v34 = vrot.slane %v497_v30, 4  ;;  %v700_v36 = vrot.slane %v697_v31, 4 }
 0x143   : > { %v501_v37 = vmax.f32 %v497_v30, %v500_v34  ;;  %v701_v38 = vmax.f32 %v697_v31, %v700_v36 }
 0x145   : > { %v502_v39 = vrot.slane %v501_v37, 2  ;;  %v702_v40 = vrot.slane %v701_v38, 2 }
 0x147   : > { %v503_v35 = vmax.f32 %v501_v37, %v502_v39  ;;  %v703_v42 = vmax.f32 %v701_v38, %v702_v40 }
 0x149   : > { %v504_v44 = vrot.slane %v503_v35, 1  ;;  %v704_v45 = vrot.slane %v703_v42, 1 }
 0x14b   : > { %v505_v46 = vmax.f32 %v503_v35, %v504_v44  ;;  %v705_v47 = vmax.f32 %v703_v42, %v704_v45 }
 0x14d   : > { %v506_v48 = vsub.f32 %v497_v30, %v505_v46  ;;  %v706_v49 = vsub.f32 %v697_v31, %v705_v47 }
 0x14f   : > { %v507_v50 = vmul.f32 1.442695, %v506_v48  ;;  %v707_v51 = vmul.f32 1.442695, %v706_v49 }
 0x151   : > { %1495 = vpow2.f32 %v507_v50 }
 0x152   : > { %1497 = vpow2.f32 %v707_v51 }
 0x15b   : > { %v1496_v52 = vpop.eup %1495 }
 0x15c   : > { %v1498_v53 = vpop.eup %1497  ;;  %v509_v54 = vrot.slane %v1496_v52, 4 }
 0x15d   : > { %v709_v55 = vrot.slane %v1498_v53, 4 }
 0x15e   : > { %v510_v56 = vadd.f32 %v1496_v52, %v509_v54 }
 0x15f   : > { %v710_v57 = vadd.f32 %v1498_v53, %v709_v55 }
 0x160   : > { %v511_v58 = vrot.slane %v510_v56, 2 }
 0x161   : > { %v711_v59 = vrot.slane %v710_v57, 2 }
 0x162   : > { %v512_v60 = vadd.f32 %v511_v58, %v510_v56 }
 0x163   : > { %v712_v61 = vadd.f32 %v711_v59, %v710_v57 }
 0x164   : > { %v513_v62 = vrot.slane %v512_v60, 1 }
 0x165   : > { %v713_v63 = vrot.slane %v712_v61, 1 }
 0x166   : > { %v514_v0 = vadd.f32 %v513_v62, %v512_v60 }
 0x167   : > { %v714_v1 = vadd.f32 %v713_v63, %v712_v61 }
 0x168   : > { %1499 = vrcp.f32 %v514_v0 }
 0x169   : > { %1501 = vrcp.f32 %v714_v1 }
 0x172   : > { %v1500_v2 = vpop.eup %1499 }
 0x173   : > { %v1502_v4 = vpop.eup %1501  ;;  %v516_v5 = vmul.f32 %v1500_v2, %v1496_v52 }
 0x174   : > { %v716_v6 = vmul.f32 %v1502_v4, %v1498_v53 }
 0x175   : > { %1190 = vmatmul.mubr.f32.vlgmr.msra.gmra.mrb[2].mxu1 %v516_v5  ;;  %v590_v7 = vmul.f32 %v964_v3, %v516_v5 }
 0x176   : > { %1260 = vmatmul.mubr.f32.vlgmr.msra.gmra.mrb[2].mxu0 %v716_v6  ;;  %v791_v8 = vmul.f32 %v964_v3, %v716_v6 }
 0x177   : > { %592 = vadd.xlane.f32.xlu0 %v590_v7 }
 0x178   : > { %794 = vadd.xlane.f32.xlu1 %v791_v8 }
 0x204   : > { %v593_v11 = vpop.xlane.xlu0 %592 }
 0x205   : > { %v795_v12 = vpop.xlane.xlu1 %794  ;;  %v594_v13 = vadd.f32 %v593_v11, %v591_v9 }
 0x206   : > { %v796_v14 = vadd.f32 %v795_v12, %v793_v10 }
 0x207   : > { %596 = vst.msk [vmem:[#allocation3] sm:$0xff] %vm595_vm4, %v594_v13 }
 0x208   : > { %797 = vst.msk [vmem:[#allocation3 + $0x8] sm:$0xff] %vm595_vm4, %v796_v14 }
 0x20e   : > { %v804_v21 = vld [vmem:[#allocation3] sm:$0xff] (!%p1045_p4) }
 0x20f   : > { %807 = vperm.xlu0 (!%p1045_p4), %1503, %v804_v21   ;;  %v830_v23 = vld [vmem:[#allocation3 + $0x8] sm:$0xff] (!%p1045_p4) }
 0x213   : > { %833 = vperm.xlu0 (!%p1045_p4), %1503, %v830_v23  }
 0x246   : > { %801 = sbr.rel (%p1045_p4) target bundleno = 996 (0x3e4), region = 82 }
 0x248   : > { %v584_v15 = vpop.f32.mrb[2].mxu1 }
 0x249   : > { %v588_v16 = vadd.f32 %v584_v15, %v517_v43  ;;  %v785_v17 = vpop.f32.mrb[2].mxu0  ;;  %v1191_v18 = vpop.f32.mrb[3].mxu1 }
 0x24a   : > { %v789_v19 = vadd.f32 %v785_v17, %v718_v41  ;;  %v1261_v20 = vpop.f32.mrb[3].mxu0 }
 0x24b   : > { %589 = vst [vmem:[#allocation2] sm:$0xff] %v588_v16 }
 0x24c   : > { %790 = vst [vmem:[#allocation2 + $0x8] sm:$0xff] %v789_v19 }
 0x252   : > { %v803_v26 = vld [vmem:[#allocation2] sm:$0xff] }
 0x253   : > { %v829_v29 = vld [vmem:[#allocation2 + $0x8] sm:$0xff] }
 0x28e   : > { %v808_v25 = vpop.permute.xlu0 %807 }
 0x28f   : > { %v810_v27 = vmul.f32 %v808_v25, %v802_v24 }
 0x291   : > { %v811_v28 = vsub.f32 %v803_v26, %v810_v27 }
 0x292   : > { %v834_v30 = vpop.permute.xlu0 %833 }
 0x293   : > { %v836_v31 = vmul.f32 %v834_v30, %v802_v24  ;;  %v812_v32 = vmul.f32 %v811_v28, %v811_v28 }
 0x295   : > { %v837_v33 = vsub.f32 %v829_v29, %v836_v31  ;;  %813 = vadd.xlane.f32.xlu1 %v812_v32 }
 0x297   : > { %v838_v34 = vmul.f32 %v837_v33, %v837_v33 }
 0x299   : > { %839 = vadd.xlane.f32.xlu1 %v838_v34 }
 0x322   : > { %v814_v36 = vpop.xlane.xlu1 %813 }
 0x323   : > { %v815_v37 = vrot.slane %v814_v36, 4 }
 0x325   : > { %v816_v38 = vadd.f32 %v815_v37, %v814_v36 }
 0x326   : > { %v840_v44 = vpop.xlane.xlu1 %839 }
 0x327   : > { %v817_v39 = vrot.slane %v816_v38, 2  ;;  %v841_v45 = vrot.slane %v840_v44, 4 }
 0x329   : > { %v818_v40 = vadd.f32 %v817_v39, %v816_v38  ;;  %v842_v46 = vadd.f32 %v841_v45, %v840_v44 }
 0x32b   : > { %v819_v35 = vrot.slane %v818_v40, 1  ;;  %v843_v47 = vrot.slane %v842_v46, 2 }
 0x32d   : > { %v820_v42 = vadd.f32 %v819_v35, %v818_v40  ;;  %v844_v49 = vadd.f32 %v843_v47, %v842_v46 }
 0x32f   : > { %1390 = vpush %v820_v42  ;;  %v845_v50 = vrot.slane %v844_v49, 1 }
 0x331   : > { %v846_v52 = vadd.f32 %v845_v50, %v844_v49 }
 0x360   : > { %s1391_s20 = spop %1390 }
 0x361   : > { %s822_s26 = smax.f32 %s1626_s25, %s1391_s20 }
 0x362   : > { %v823_v48 = vstv %s822_s26 }
 0x363   : > { %1504 = vrsqrt.f32 %v823_v48 }
 0x36d   : > { %v1505_v51 = vpop.eup %1504 }
 0x36e   : > { %1392 = vpush %v1505_v51 }
 0x36f   : > { %1394 = vpush %v846_v52 }
 0x39f   : > { %s1393_s18 = spop %1392 }
 0x3a0   : > { %v826_v53 = vstv %s1393_s18  ;;  %s1395_s8 = spop %1394 }
 0x3a1   : > { %v827_v54 = vmul.f32 %v826_v53, %v811_v28  ;;  %s848_s9 = smax.f32 %s1626_s25, %s1395_s8 }
 0x3a2   : > { %v849_v55 = vstv %s848_s9 }
 0x3a3   : > { %828 = vst [vmem:[%s1830_s30] sm:$0xff] %v827_v54  ;;  %1506 = vrsqrt.f32 %v849_v55 }
 0x3ad   : > { %v1507_v56 = vpop.eup %1506 }
 0x3ae   : > { %1396 = vpush %v1507_v56 }
 0x3df   : > { %s1397_s6 = spop %1396 }
 0x3e0   : > { %v852_v57 = vstv %s1397_s6 }
 0x3e1   : > { %v853_v58 = vmul.f32 %v852_v57, %v837_v33 }
 0x3e3   : > { %1046 = vst [vmem:[%s1830_s30 + $0x8] sm:$0xff] %v853_v58 }
 0x3e4 PF: > { %s1053_s29 = sshll.u32 %s1606_s21, 8  ;;  %s870_s25 = sshll.u32 %s1830_s30, 4  ;;  %s2034_s25 = int_to_ptr.vmem [resolvable:$true] %s870_s25 }
 0x3e5   : > { %s2031_s20 = scalar_lea.hbm %s2100_s4, %s1053_s29  ;;  %s2038_s26 = scalar_lea.sflag [#allocation6], %s368_s13 }
 0x3e6   : > { %s1508_s18 = scalar_lea.vmem %s2034_s25, 256  ;;  %s1627_s21 = smov [#allocation5]  }
 0x3e7   : > { %p1509_p5 = scmp.ne.s32.totalorder %s2034_s25, %s1508_s18  ;;  %s1512_s8 = sshll.u32 %s1627_s21, 4  ;;  %s1513_s8 = int_to_ptr.vmem [resolvable:$false] %s1512_s8 }
 0x3e8   : > { %s1514_s9 = scalar_lea.vmem %s1513_s8, 512  ;;  %p1515_p9 = scmp.lt.s32.totalorder %s2034_s25, %s1513_s8 }
 0x3e9   : > { %p1510_p6 = pnand %p1509_p5, %p1727_p7  ;;  %p1516_p10 = scmp.lt.s32.totalorder %s1514_s9, %s1508_s18 }
 0x3eb   : > { %p1511_p8 = pneg %p1510_p6  ;;  %p1517_p11 = por %p1516_p10, %p1515_p9 }
 0x3ed   : > { %p1518_p13 = pnand %p1517_p11, %p1511_p8 }
 0x3ef   : > { %1521 = shalt.err (!%p1518_p13)
}
 0x3f0   : > { %s1522_s13 = scalar_lea.hbm %s2031_s20, 256  ;;  %s1526_s29 = scalar_lea.hbm %s2100_s4, 512 }
 0x3f1   : > { %p1523_p0 = scmp.ne.s32.totalorder %s2031_s20, %s1522_s13  ;;  %p1527_p3 = scmp.lt.u32.totalorder %s2031_s20, %s2100_s4 }
 0x3f2   : > { %p1528_p4 = scmp.lt.u32.totalorder %s1526_s29, %s1522_s13  ;;  %p1530_p6 = scmp.lt.u32.totalorder %s1522_s13, %s2031_s20 }
 0x3f3   : > { %p1524_p1 = pnand %p1523_p0, %p1727_p7 }
 0x3f4   : > { %p1529_p5 = por %p1528_p4, %p1527_p3 }
 0x3f5   : > { %p1525_p2 = pneg %p1524_p1 }
 0x3f6   : > { %p1531_p8 = por %p1530_p6, %p1529_p5 }
 0x3f8   : > { %p1532_p9 = pnand %p1531_p8, %p1525_p2 }
 0x3fa   : > { %1535 = shalt.err (!%p1532_p9)
}
 0x3fb   : > { %s1628_s18 = smov 128   ;;  %s1629_s21 = smov 8  }
 0x3fc   : > { %1398 = dma.vmem_to_hbm [thread:$0]  (%p1727_p7), %s2034_s25, 256, %s2031_s20, %s2038_s26, %s1628_s18, %s1628_s18, %s1629_s21  }
 0x3fd PF: > { %p1404_p10 = scmp.ge.s32.totalorder %s1618_s24, 2  ;;  %s885_s8 = sand.u32 1, %s1582_s15  }
 0x3fe   : > { %s886_s9 = scalar_lea.sflag [#allocation6], %s885_s8 }
 0x3ff   : > { %p1401_p11 = pnand %p1404_p10, %p1735_p12 }
 0x401   : > { %1577 = dma.done.wait (!%p1401_p11), %s886_s9, 256  }
 0x402   : > { %1579 = vsyncadd (!%p1401_p11), %s886_s9, 4294967040  ;;  %s17_s24 = sadd.s32 1, %s1618_s24   ;;  %s2106_s15 = smov %s1586_s16 }
 0x403   : > { %p14_p13 = scmp.ge.s32.totalorder %s17_s24, 6   ;;  %s2107_s16 = smov %s1590_s17 }
 0x404   : > { %s2108_s17 = smov %s1740_s11  ;;  %s2109_s18 = smov %s1598_s19 }
 0x405   : > { %s2110_s19 = smov %s1743_s12  ;;  %s2111_s20 = smov %s1610_s22 }
 0x406   : > { %s2112_s21 = smov %s1614_s23  ;;  %s2113_s22 = smov %s2116_s27 }
 0x407   : > { %s2114_s23 = smov %s2120_s28  ;;  %16 = sbr.rel (!%p14_p13) target bundleno = 6 (0x6), region = 126 }
 0x40e   :  { %891 = vsyncpa [#allocation6], 1 }
 0x40f   :  { %893 = vsyncpa [#allocation6 + $0x1], 1 }

</bundles_post_ra>
